<compile_context>
chip_gen: v5e
topology: v5e:2x2
jax: 0.10.0
libtpu: 0.0.40
codegen_flags: <defaults>
</compile_context>

<pallas_src>
import jax
import jax.numpy as jnp
from jax.experimental import pallas as pl
from jax.experimental.pallas import tpu as pltpu

HIDDEN1 = 128
HIDDEN2 = 64
LANE = 128  # narrow hidden dims are zero-padded up to one full vreg lane width


def actor_net_kernel(x_ref, w1_ref, b1_ref, w2_ref, b2_ref, w3_ref, b3_ref, o_ref):
    # fc1 + relu  (bf16 operands, f32 MXU accumulation; f32 epilogue)
    h1 = jnp.dot(x_ref[...], w1_ref[...], preferred_element_type=jnp.float32)
    h1 = jnp.maximum(h1 + b1_ref[...], 0.0)
    # fc2 + relu  (w2/b2 columns 64..127 are zero-padded -> relu(0) = 0)
    h2 = jnp.dot(h1.astype(jnp.bfloat16), w2_ref[...],
                 preferred_element_type=jnp.float32)
    h2 = jnp.maximum(h2 + b2_ref[...], 0.0)
    # fc3 + tanh: only the real action_dim columns are computed and stored
    # (w3 rows 64..127 are zero-padded and multiply h2's zero-padded columns).
    h3 = jnp.dot(h2.astype(jnp.bfloat16), w3_ref[...],
                 preferred_element_type=jnp.float32)
    o_ref[...] = jnp.tanh(h3 + b3_ref[...]).astype(o_ref.dtype)


def _round_up(n, m):
    return ((n + m - 1) // m) * m


def _pad2d(a, rows, cols):
    assert a.shape[0] <= rows and a.shape[1] <= cols, (a.shape, rows, cols)
    return jnp.pad(a, ((0, rows - a.shape[0]), (0, cols - a.shape[1])))


def prepare_params(params):
    """One-time padding/casting of Actor_Net params for the Pallas kernel.

    Call once (e.g. after each optimizer step) and reuse the result across
    forward calls -- keeps ~6 pad/convert XLA kernels out of the hot path.
    """
    w1, b1, w2, b2, w3, b3 = params
    state_dim = w1.shape[0]
    action_dim = w3.shape[1]
    assert w1.shape == (state_dim, HIDDEN1), w1.shape
    assert w2.shape == (HIDDEN1, HIDDEN2), w2.shape
    assert w3.shape == (HIDDEN2, action_dim), w3.shape
    assert HIDDEN2 <= LANE

    w1_p = jnp.asarray(w1, jnp.bfloat16)                                  # (S, 128)
    b1_p = jnp.asarray(b1, jnp.float32).reshape(1, HIDDEN1)               # (1, 128)
    w2_p = _pad2d(jnp.asarray(w2, jnp.bfloat16), HIDDEN1, LANE)           # (128, 128)
    b2_p = _pad2d(jnp.asarray(b2, jnp.float32).reshape(1, HIDDEN2), 1, LANE)  # (1, 128)
    w3_p = _pad2d(jnp.asarray(w3, jnp.bfloat16), LANE, action_dim)        # (128, A)
    b3_p = jnp.asarray(b3, jnp.float32).reshape(1, action_dim)            # (1, A)
    return (w1_p, b1_p, w2_p, b2_p, w3_p, b3_p)


def actor_net_forward(x, prepared_params, *, tile_batch=2048):
    """y = tanh(relu(relu(x@W1+b1)@W2+b2)@W3+b3).

    x: (B, state_dim) float32; prepared_params: output of prepare_params().
    """
    w1_p, b1_p, w2_p, b2_p, w3_p, b3_p = prepared_params
    B, state_dim = x.shape
    assert w1_p.shape[0] == state_dim, (w1_p.shape, state_dim)
    action_dim = w3_p.shape[1]

    # Batch tiling: pad B to a multiple of 8, and split into >=2 tiles when the
    # batch is large enough so both v7x TensorCores get work.
    B8 = _round_up(B, 8)
    half = _round_up(-(-B8 // 2), 8)          # ceil(B8/2) rounded up to 8 rows
    TB = max(8, min(tile_batch, half))
    B_pad = _round_up(B8, TB)
    if B_pad != B:
        x = jnp.pad(x, ((0, B_pad - B), (0, 0)))
    x_bf16 = x.astype(jnp.bfloat16)

    grid = (B_pad // TB,)
    const = lambda i: (0, 0)  # weights/biases stay resident across batch tiles

    flops = 2 * B_pad * (state_dim * HIDDEN1 + HIDDEN1 * LANE + LANE * action_dim)
    bytes_accessed = (
        x_bf16.size * 2
        + (w1_p.size + w2_p.size + w3_p.size) * 2
        + (b1_p.size + b2_p.size + b3_p.size) * 4
        + B_pad * action_dim * 4
    )

    out = pl.pallas_call(
        actor_net_kernel,
        out_shape=jax.ShapeDtypeStruct((B_pad, action_dim), jnp.float32),
        grid_spec=pltpu.PrefetchScalarGridSpec(
            num_scalar_prefetch=0,
            grid=grid,
            in_specs=[
                pl.BlockSpec((TB, state_dim), lambda i: (i, 0)),   # x tile
                pl.BlockSpec((state_dim, HIDDEN1), const),         # w1
                pl.BlockSpec((1, HIDDEN1), const),                 # b1
                pl.BlockSpec((HIDDEN1, LANE), const),              # w2 (col-padded)
                pl.BlockSpec((1, LANE), const),                    # b2 (col-padded)
                pl.BlockSpec((LANE, action_dim), const),           # w3 (row-padded)
                pl.BlockSpec((1, action_dim), const),              # b3
            ],
            out_specs=pl.BlockSpec((TB, action_dim), lambda i: (i, 0)),
        ),
        compiler_params=pltpu.CompilerParams(
            dimension_semantics=("parallel",),   # v7x: batch tiles over 2 TCs
        ),
        cost_estimate=pl.CostEstimate(
            flops=flops,
            transcendentals=B_pad * action_dim,
            bytes_accessed=bytes_accessed,
        ),
    )(x_bf16, w1_p, b1_p, w2_p, b2_p, w3_p, b3_p)

    # Only batch padding (if any) needs stripping; no lane-dim slice pass.
    return out if B_pad == B else out[:B]


def init_params(key, state_dim, action_dim):
    k1, k2, k3, kb1, kb2, kb3 = jax.random.split(key, 6)
    # PyTorch: weight.data.normal_(0, 0.01) -> mean 0, std 0.01
    #          bias.data.normal_(0.01)      -> mean 0.01, std 1.0
    w1 = 0.01 * jax.random.normal(k1, (state_dim, HIDDEN1), dtype=jnp.float32)
    b1 = 0.01 + jax.random.normal(kb1, (1, HIDDEN1), dtype=jnp.float32)
    w2 = 0.01 * jax.random.normal(k2, (HIDDEN1, HIDDEN2), dtype=jnp.float32)
    b2 = 0.01 + jax.random.normal(kb2, (1, HIDDEN2), dtype=jnp.float32)
    w3 = 0.01 * jax.random.normal(k3, (HIDDEN2, action_dim), dtype=jnp.float32)
    b3 = 0.01 + jax.random.normal(kb3, (1, action_dim), dtype=jnp.float32)
    return (w1, b1, w2, b2, w3, b3)


if __name__ == "__main__":
    key = jax.random.PRNGKey(0)
    state_dim = 16
    action_dim = 8
    batch = 8

    pkey, xkey = jax.random.split(key)
    params = init_params(pkey, state_dim, action_dim)
    prepared = prepare_params(params)     # one-time prep, outside the hot path
    x = jax.random.normal(xkey, (batch, state_dim), dtype=jnp.float32)

    out = actor_net_forward(x, prepared)
    jax.block_until_ready(out)

    # Pure-JAX f32 reference (bf16 matmul operands -> relaxed tolerance).
    w1, b1, w2, b2, w3, b3 = params
    h1 = jnp.maximum(x @ w1 + b1, 0.0)
    h2 = jnp.maximum(h1 @ w2 + b2, 0.0)
    ref = jnp.tanh(h2 @ w3 + b3)
    assert out.shape == (batch, action_dim), out.shape
    assert jnp.allclose(out, ref, atol=3e-2, rtol=3e-2), (
        float(jnp.max(jnp.abs(out - ref)))
    )

    print("KERNEL_OK")
</pallas_src>

<mosaic_0001>
module attributes {stable_mosaic.version = 11 : i64} {
  func.func @actor_net_kernel(%arg0: i32, %arg1: memref<8x16xbf16, #tpu.memory_space<vmem>>, %arg2: memref<16x128xbf16, #tpu.memory_space<vmem>>, %arg3: memref<1x128xf32, #tpu.memory_space<vmem>>, %arg4: memref<128x128xbf16, #tpu.memory_space<vmem>>, %arg5: memref<1x128xf32, #tpu.memory_space<vmem>>, %arg6: memref<128x8xbf16, #tpu.memory_space<vmem>>, %arg7: memref<1x8xf32, #tpu.memory_space<vmem>>, %arg8: memref<8x8xf32, #tpu.memory_space<vmem>>) attributes {dimension_semantics = [#tpu.dimension_semantics<parallel>], iteration_bounds = array<i64: 1>, scalar_prefetch = 0 : i64, scratch_operands = 0 : i64, tpu.core_type = #tpu.core_type<tc>, window_params = [{transform_indices = @transform_0, window_bounds = array<i64: 8, 16>}, {pipeline_mode = #tpu.pipeline_mode<synchronous>, transform_indices = @transform_1, window_bounds = array<i64: 16, 128>}, {pipeline_mode = #tpu.pipeline_mode<synchronous>, transform_indices = @transform_2, window_bounds = array<i64: 1, 128>}, {pipeline_mode = #tpu.pipeline_mode<synchronous>, transform_indices = @transform_3, window_bounds = array<i64: 128, 128>}, {pipeline_mode = #tpu.pipeline_mode<synchronous>, transform_indices = @transform_4, window_bounds = array<i64: 1, 128>}, {pipeline_mode = #tpu.pipeline_mode<synchronous>, transform_indices = @transform_5, window_bounds = array<i64: 128, 8>}, {pipeline_mode = #tpu.pipeline_mode<synchronous>, transform_indices = @transform_6, window_bounds = array<i64: 1, 8>}, {transform_indices = @transform_7, window_bounds = array<i64: 8, 8>}]} {
    %c0 = arith.constant 0 : index
    %c0_0 = arith.constant 0 : index
    %0 = vector.load %arg1[%c0, %c0_0] : memref<8x16xbf16, #tpu.memory_space<vmem>>, vector<8x16xbf16>
    %c0_1 = arith.constant 0 : index
    %c0_2 = arith.constant 0 : index
    %1 = vector.load %arg2[%c0_1, %c0_2] : memref<16x128xbf16, #tpu.memory_space<vmem>>, vector<16x128xbf16>
    %cst = arith.constant dense<0.000000e+00> : vector<8x128xf32>
    %2 = tpu.matmul %0, %1, %cst {dimension_numbers = #tpu.dot_dimension_numbers<[1], [0], [0], [1], [0, 0, 1, 1], [], []>} : vector<8x16xbf16>, vector<16x128xbf16>, vector<8x128xf32> -> vector<8x128xf32>
    %c0_3 = arith.constant 0 : index
    %c0_4 = arith.constant 0 : index
    %3 = vector.load %arg3[%c0_3, %c0_4] : memref<1x128xf32, #tpu.memory_space<vmem>>, vector<1x128xf32>
    %4 = vector.broadcast %3 : vector<1x128xf32> to vector<8x128xf32>
    %5 = arith.addf %2, %4 : vector<8x128xf32>
    %cst_5 = arith.constant 0.000000e+00 : f32
    %6 = vector.broadcast %cst_5 : f32 to vector<8x128xf32>
    %7 = arith.maximumf %5, %6 : vector<8x128xf32>
    %8 = arith.truncf %7 : vector<8x128xf32> to vector<8x128xbf16>
    %c0_6 = arith.constant 0 : index
    %c0_7 = arith.constant 0 : index
    %9 = vector.load %arg4[%c0_6, %c0_7] : memref<128x128xbf16, #tpu.memory_space<vmem>>, vector<128x128xbf16>
    %cst_8 = arith.constant dense<0.000000e+00> : vector<8x128xf32>
    %10 = tpu.matmul %8, %9, %cst_8 {dimension_numbers = #tpu.dot_dimension_numbers<[1], [0], [0], [1], [0, 0, 1, 1], [], []>} : vector<8x128xbf16>, vector<128x128xbf16>, vector<8x128xf32> -> vector<8x128xf32>
    %c0_9 = arith.constant 0 : index
    %c0_10 = arith.constant 0 : index
    %11 = vector.load %arg5[%c0_9, %c0_10] : memref<1x128xf32, #tpu.memory_space<vmem>>, vector<1x128xf32>
    %12 = vector.broadcast %11 : vector<1x128xf32> to vector<8x128xf32>
    %13 = arith.addf %10, %12 : vector<8x128xf32>
    %cst_11 = arith.constant 0.000000e+00 : f32
    %14 = vector.broadcast %cst_11 : f32 to vector<8x128xf32>
    %15 = arith.maximumf %13, %14 : vector<8x128xf32>
    %16 = arith.truncf %15 : vector<8x128xf32> to vector<8x128xbf16>
    %c0_12 = arith.constant 0 : index
    %c0_13 = arith.constant 0 : index
    %17 = vector.load %arg6[%c0_12, %c0_13] : memref<128x8xbf16, #tpu.memory_space<vmem>>, vector<128x8xbf16>
    %cst_14 = arith.constant dense<0.000000e+00> : vector<8x8xf32>
    %18 = tpu.matmul %16, %17, %cst_14 {dimension_numbers = #tpu.dot_dimension_numbers<[1], [0], [0], [1], [0, 0, 1, 1], [], []>} : vector<8x128xbf16>, vector<128x8xbf16>, vector<8x8xf32> -> vector<8x8xf32>
    %c0_15 = arith.constant 0 : index
    %c0_16 = arith.constant 0 : index
    %19 = vector.load %arg7[%c0_15, %c0_16] : memref<1x8xf32, #tpu.memory_space<vmem>>, vector<1x8xf32>
    %20 = vector.broadcast %19 : vector<1x8xf32> to vector<8x8xf32>
    %21 = arith.addf %18, %20 : vector<8x8xf32>
    %22 = math.tanh %21 : vector<8x8xf32>
    %c0_17 = arith.constant 0 : index
    %c0_18 = arith.constant 0 : index
    %23 = vector.load %arg8[%c0_17, %c0_18] : memref<8x8xf32, #tpu.memory_space<vmem>>, vector<8x8xf32>
    tpu.vector_store %arg8[%c0_17, %c0_18], %22 {strides = array<i32>} : memref<8x8xf32, #tpu.memory_space<vmem>>, vector<8x8xf32>,
    return
  }
  func.func @transform_0(%arg0: i32) -> (i32, i32) {
    %c0_i32 = arith.constant 0 : i32
    %c0_i32_0 = arith.constant 0 : i32
    return %arg0, %c0_i32 : i32, i32
  }
  func.func @transform_1(%arg0: i32) -> (i32, i32) {
    %c0_i32 = arith.constant 0 : i32
    %c0_i32_0 = arith.constant 0 : i32
    %c0_i32_1 = arith.constant 0 : i32
    return %c0_i32, %c0_i32_0 : i32, i32
  }
  func.func @transform_2(%arg0: i32) -> (i32, i32) {
    %c0_i32 = arith.constant 0 : i32
    %c0_i32_0 = arith.constant 0 : i32
    %c0_i32_1 = arith.constant 0 : i32
    return %c0_i32, %c0_i32_0 : i32, i32
  }
  func.func @transform_3(%arg0: i32) -> (i32, i32) {
    %c0_i32 = arith.constant 0 : i32
    %c0_i32_0 = arith.constant 0 : i32
    %c0_i32_1 = arith.constant 0 : i32
    return %c0_i32, %c0_i32_0 : i32, i32
  }
  func.func @transform_4(%arg0: i32) -> (i32, i32) {
    %c0_i32 = arith.constant 0 : i32
    %c0_i32_0 = arith.constant 0 : i32
    %c0_i32_1 = arith.constant 0 : i32
    return %c0_i32, %c0_i32_0 : i32, i32
  }
  func.func @transform_5(%arg0: i32) -> (i32, i32) {
    %c0_i32 = arith.constant 0 : i32
    %c0_i32_0 = arith.constant 0 : i32
    %c0_i32_1 = arith.constant 0 : i32
    return %c0_i32, %c0_i32_0 : i32, i32
  }
  func.func @transform_6(%arg0: i32) -> (i32, i32) {
    %c0_i32 = arith.constant 0 : i32
    %c0_i32_0 = arith.constant 0 : i32
    %c0_i32_1 = arith.constant 0 : i32
    return %c0_i32, %c0_i32_0 : i32, i32
  }
  func.func @transform_7(%arg0: i32) -> (i32, i32) {
    %c0_i32 = arith.constant 0 : i32
    %c0_i32_0 = arith.constant 0 : i32
    return %arg0, %c0_i32 : i32, i32
  }
}

</mosaic_0001>

<bundles_post_ra>
// kernel: tpu_custom_call.1
= control target key start
LH: loop header
LB: loop body
LE: loop exit
PB: predicated region body
PF: predicated region fallthrough
CT: control target
= control target key end

     0   :  { %12 = vsyncpa [#allocation3], 0  ;;  %s599_s0 = inlined_call_operand.vmem [shape: bf16[8,16], index: 0, kind: input, shape index: {}]   ;;  %s600_s1 = inlined_call_operand.hbm [shape: bf16[16,128], index: 1, kind: input, shape index: {}]   ;;  %s601_s2 = inlined_call_operand.hbm [shape: f32[1,128], index: 2, kind: input, shape index: {}]   ;;  %s602_s3 = inlined_call_operand.vmem [shape: bf16[128,128], index: 3, kind: input, shape index: {}]   ;;  %s603_s4 = inlined_call_operand.hbm [shape: f32[1,128], index: 4, kind: input, shape index: {}]   ;;  %s604_s5 = inlined_call_operand.vmem [shape: bf16[128,8], index: 5, kind: input, shape index: {}]   ;;  %s605_s6 = inlined_call_operand.vmem [shape: f32[1,8], index: 6, kind: input, shape index: {}]   ;;  %s606_s7 = inlined_call_operand.hbm [shape: f32[8,8], index: 7, kind: output, shape index: {}]  }
   0x1   :  { %13 = vsyncpa [#allocation6], 0  ;;  %s35_s26 = sshll.u32 %s601_s2, 4  ;;  %s36_s26 = int_to_ptr.hbm [resolvable:$true] %s35_s26 }
   0x2   :  { %14 = vsyncpa [#allocation4], 0  ;;  %s487_s27 = smov [#allocation5]   ;;  %s21_s8 = sshll.u32 %s600_s1, 4  ;;  %s22_s8 = int_to_ptr.hbm [resolvable:$true] %s21_s8 }
   0x3   :  { %s37_s28 = sshll.u32 %s487_s27, 4  ;;  %s488_s9 = smov [#allocation2]   ;;  %s38_s28 = int_to_ptr.vmem [resolvable:$true] %s37_s28 }
   0x4   :  { %40 = dma.hbm_to_vmem [thread:$0]  %s36_s26, 16, %s38_s28, [#allocation6]  }
   0x5   :  { %s23_s10 = sshll.u32 %s488_s9, 4  ;;  %s489_s11 = smov 64   ;;  %s24_s10 = int_to_ptr.vmem [resolvable:$true] %s23_s10 }
   0x6   :  { %s490_s12 = smov 4   ;;  %s48_s2 = sshll.u32 %s603_s4, 4  ;;  %s49_s2 = int_to_ptr.hbm [resolvable:$true] %s48_s2 }
   0x7   :  { %29 = dma.hbm_to_vmem [thread:$0]  %s22_s8, 128, %s24_s10, [#allocation3], %s489_s11, %s489_s11, %s490_s12  }
   0x8   :  { %s491_s15 = smov [#allocation7]  }
   0x9   :  { %s50_s16 = sshll.u32 %s491_s15, 4  ;;  %s51_s16 = int_to_ptr.vmem [resolvable:$true] %s50_s16 }
   0xa   :  { %53 = dma.hbm_to_vmem [thread:$0]  %s49_s2, 16, %s51_s16, [#allocation6]  }
   0xb   :  { %481 = dma.done.wait [#allocation3], 128  }
   0xc   :  { %482 = vsyncadd [#allocation3], 4294967168 }
   0xd   :  { %483 = dma.done.wait [#allocation6], 32  }
   0xe   :  { %484 = vsyncadd [#allocation6], 4294967264  ;;  %v357_v0 = vld [vmem:[#allocation2] sm:$0xff]  ;;  %v365_v1 = vld [vmem:[%s602_s3 + $0x38] sm:$0xff]  ;;  %vm84_vm0 = vcmask 130048   ;;  %s492_s23 = smov [#allocation8]  }
   0xf   :  { %95 = vmatpush.bf16.msra.mxu0 %v357_v0  ;;  %v71_v2 = vld [vmem:[%s599_s0] sm:$0xf]  ;;  %171 = vmatpush.bf16.msra.mxu1 %v365_v1  ;;  %v364_v3 = vld [vmem:[%s602_s3 + $0x30] sm:$0xff]  ;;  %v363_v4 = vld [vmem:[%s602_s3 + $0x28] sm:$0xff]  ;;  %s275_s24 = sshll.u32 %s492_s23, 4  ;;  %vm268_vm1 = vcmask 64512   ;;  %s276_s24 = int_to_ptr.vmem [resolvable:$true] %s275_s24 }
  0x10   :  { %v362_v5 = vld [vmem:[%s602_s3 + $0x20] sm:$0xff]  ;;  %v361_v6 = vld [vmem:[%s602_s3 + $0x18] sm:$0xff]  ;;  %v360_v7 = vld [vmem:[%s602_s3 + $0x10] sm:$0xff] }
  0x11   :  { %v359_v8 = vld [vmem:[%s602_s3 + $0x8] sm:$0xff]  ;;  %v358_v9 = vld [vmem:[%s602_s3] sm:$0xff]  ;;  %v373_v10 = vld [vmem:[%s604_s5 + $0x38] sm:$0xff] }
  0x12   :  { %292 = vmatmul.msk.bf16.vlgmr.msra.gmra.mxu0 %vm84_vm0, %v71_v2  ;;  %254 = vmatpush.bf16.msra.mxu2 %v373_v10  ;;  %v372_v11 = vld [vmem:[%s604_s5 + $0x30] sm:$0xff]  ;;  %v371_v12 = vld [vmem:[%s604_s5 + $0x28] sm:$0xff]  ;;  %v370_v13 = vld [vmem:[%s604_s5 + $0x20] sm:$0xff] }
  0x13   :  { %172 = vmatpush.bf16.msra.mxu1 %v364_v3  ;;  %v369_v14 = vld [vmem:[%s604_s5 + $0x18] sm:$0xff]  ;;  %v368_v15 = vld [vmem:[%s604_s5 + $0x10] sm:$0xff]  ;;  %v380_v16 = vld [vmem:[#allocation5] ss:$0 sm:$0xff] }
  0x14   :  { %v367_v22 = vld [vmem:[%s604_s5 + $0x8] sm:$0xff]  ;;  %v366_v23 = vld [vmem:[%s604_s5] sm:$0xff]  ;;  %s277_s5 = sshll.u32 %s606_s7, 4  ;;  %s278_s5 = int_to_ptr.hbm [resolvable:$true] %s277_s5 }
  0x15   :  { %v381_v24 = vld [vmem:[#allocation7] ss:$0 sm:$0xff]  ;;  %v382_v30 = vld [vmem:[%s605_s6] ss:$0 sm:$0xff] }
  0x16   :  { %255 = vmatpush.bf16.msra.mxu2 %v372_v11 }
  0x17   :  { %173 = vmatpush.bf16.msra.mxu1 %v363_v4 }
  0x1a   :  { %256 = vmatpush.bf16.msra.mxu2 %v371_v12 }
  0x1b   :  { %174 = vmatpush.bf16.msra.mxu1 %v362_v5 }
  0x1e   :  { %257 = vmatpush.bf16.msra.mxu2 %v370_v13 }
  0x1f   :  { %175 = vmatpush.bf16.msra.mxu1 %v361_v6 }
  0x22   :  { %258 = vmatpush.bf16.msra.mxu2 %v369_v14 }
  0x23   :  { %176 = vmatpush.bf16.msra.mxu1 %v360_v7 }
  0x26   :  { %259 = vmatpush.bf16.msra.mxu2 %v368_v15 }
  0x27   :  { %177 = vmatpush.bf16.msra.mxu1 %v359_v8 }
  0x2a   :  { %260 = vmatpush.bf16.msra.mxu2 %v367_v22 }
  0x2b   :  { %178 = vmatpush.bf16.msra.mxu1 %v358_v9 }
  0x2e   :  { %261 = vmatpush.bf16.msra.mxu2 %v366_v23 }
  0x8f   :  { %v97_v17 = vpop.f32.mrf.mxu0 }
  0x90   :  { %v98_v18 = vadd.f32 %v380_v16, %v97_v17 }
  0x92   :  { %v101_v19 = vmax.f32 %v98_v18, 0.0 }
  0x94   :  { %v102_v20 = vpack.c.bf16 %v101_v19, %v101_v19 }
  0x96   :  { %179 = vmatmul.bf16.vlgmr.msra.gmra.mxu1 %v102_v20 }
  0x97   :  { %v99_v21 = vpop.f32.mrf.mxu0 }
 0x113   :  { %v180_v25 = vpop.f32.mrf.mxu1 }
 0x114   :  { %v181_v26 = vadd.f32 %v381_v24, %v180_v25 }
 0x116   :  { %v184_v27 = vmax.f32 %v181_v26, 0.0 }
 0x118   :  { %v185_v28 = vpack.c.bf16 %v184_v27, %v184_v27 }
 0x11a   :  { %262 = vmatmul.bf16.vlgmr.msra.gmra.mxu2 %v185_v28 }
 0x11b   :  { %v182_v29 = vpop.f32.mrf.mxu1 }
 0x19d   :  { %v263_v31 = vpop.f32.mrf.mxu2 }
 0x19e   :  { %v264_v32 = vadd.f32 %v382_v30, %v263_v31 }
 0x1a0   :  { %383 = vtanh.f32 %v264_v32 }
 0x1a5   :  { %v265_v33 = vpop.f32.mrf.mxu2 }
 0x1a6   :  { %v384_v34 = vpop.eup %383 }
 0x1a7   :  { %269 = vst.msk [vmem:[#allocation8] sm:$0xff] %vm268_vm1, %v384_v34 }
 0x1a8   :  { %280 = dma.vmem_to_hbm [thread:$0]  %s276_s24, 128, %s278_s5, [#allocation4]  }
 0x1a9   :  { %485 = dma.done.wait [#allocation4], 128  }
 0x1aa   :  { %486 = vsyncadd [#allocation4], 4294967168 }
 0x1ab   :  { %285 = vsyncpa [#allocation3], 1 }
 0x1ac   :  { %286 = vsyncpa [#allocation6], 1 }
 0x1ad   :  { %287 = vsyncpa [#allocation4], 1 }

</bundles_post_ra>
